<compile_context>
chip_gen: v5e
topology: v5e:2x2
jax: 0.10.0
libtpu: 0.0.40
codegen_flags: <defaults>
</compile_context>

<pallas_src>
import jax
import jax.numpy as jnp
from jax.experimental import pallas as pl
from jax.experimental.pallas import tpu as pltpu


_BF16 = jnp.bfloat16
_VMEM_BUDGET = 40 << 20      # working-set target: leaves headroom on v7x (64 MiB)
_VMEM_CAP = 64 << 20         # never ask for more than v7x physical VMEM
_VMEM_FLOOR = 16 << 20
_SMALL_FUSED_BYTES = 16 << 20  # below this, fuse the whole GCN into one block


def _round_up(x, m):
    return ((x + m - 1) // m) * m


def _pad2d(x, rows, cols):
    r, c = x.shape
    if r == rows and c == cols:
        return x
    return jnp.pad(x, ((0, rows - r), (0, cols - c)))


def _vmem_params(total_bytes, dims=None):
    limit = max(min(int(total_bytes) + (8 << 20), _VMEM_CAP), _VMEM_FLOOR)
    if dims is None:
        return pltpu.CompilerParams(vmem_limit_bytes=limit)
    return pltpu.CompilerParams(dimension_semantics=dims, vmem_limit_bytes=limit)


# ------------------------------ kernels --------------------------------------

def _fused_gcn_kernel(a_ref, x_ref, w1t_ref, w2t_ref, o_ref):
    """Whole 2-layer GCN in one VMEM-resident block (small graphs)."""
    a = a_ref[...]
    ax = jnp.dot(a, x_ref[...], preferred_element_type=jnp.float32)
    h = jnp.maximum(
        jnp.dot(ax.astype(_BF16), w1t_ref[...], preferred_element_type=jnp.float32),
        0.0)
    ah = jnp.dot(a, h.astype(_BF16), preferred_element_type=jnp.float32)
    o_ref[...] = jnp.dot(ah.astype(_BF16), w2t_ref[...],
                         preferred_element_type=jnp.float32).astype(o_ref.dtype)


def _make_agg_kernel(has_wa, has_wb, apply_relu, b_resident, tile_k):
    """Row-tiled  [[relu]((A@B) [@Wa])] [@Wb]  with K-reduction over A columns.

    Refs: a, b, [wa], [wb], out, acc_scratch(f32).
    If b_resident, b holds the full (N_p, F) matrix and the k-chunk is sliced
    in-kernel; otherwise b is the streamed (tile_k, F) chunk.
    """
    def kernel(*refs):
        a_ref, b_ref = refs[0], refs[1]
        idx = 2
        wa_ref = wb_ref = None
        if has_wa:
            wa_ref = refs[idx]; idx += 1
        if has_wb:
            wb_ref = refs[idx]; idx += 1
        o_ref, acc_ref = refs[idx], refs[idx + 1]

        k = pl.program_id(1)

        @pl.when(k == 0)
        def _():
            acc_ref[...] = jnp.zeros_like(acc_ref)

        if b_resident:
            start = pl.multiple_of(k * tile_k, tile_k)
            b_blk = b_ref[pl.ds(start, tile_k), :]
        else:
            b_blk = b_ref[...]

        acc_ref[...] += jnp.dot(a_ref[...], b_blk,
                                preferred_element_type=jnp.float32)

        @pl.when(k == pl.num_programs(1) - 1)
        def _():
            z = acc_ref[...]
            if has_wa:
                z = jnp.dot(z.astype(wa_ref.dtype), wa_ref[...],
                            preferred_element_type=jnp.float32)
            if apply_relu:
                z = jnp.maximum(z, 0.0)
            if has_wb:
                z = jnp.dot(z.astype(wb_ref.dtype), wb_ref[...],
                            preferred_element_type=jnp.float32)
            o_ref[...] = z.astype(o_ref.dtype)

    return kernel


def _dense_matmul_kernel(x_ref, wt_ref, o_ref, acc_ref):
    """Row-tiled X @ Wt with a K-reduction grid axis and f32 VMEM accumulator."""
    k = pl.program_id(1)

    @pl.when(k == 0)
    def _():
        acc_ref[...] = jnp.zeros_like(acc_ref)

    acc_ref[...] += jnp.dot(x_ref[...], wt_ref[...],
                            preferred_element_type=jnp.float32)

    @pl.when(k == pl.num_programs(1) - 1)
    def _():
        o_ref[...] = acc_ref[...].astype(o_ref.dtype)


# -------------------------- pallas_call wrappers ------------------------------

def _choose_tiles(N):
    """Pick (tile_m, tile_k, N_p).

    Priority: minimize padded N (A waste is quadratic in N_p), then prefer
    >=2 row tiles (keeps both v7x TensorCores busy), then the widest K slab
    (amortizes per-grid-step overhead), then the larger row tile.
    """
    best_key, best = None, None
    for tm in (512, 256, 128):
        for tk in (2048, 1024, 512, 256):
            N_p = _round_up(N, max(tm, tk))
            key = (N_p, 0 if (N_p // tm) >= 2 else 1, -tk, -tm)
            if best_key is None or key < best_key:
                best_key, best = key, (tm, tk, N_p)
    return best


def _agg_working_set(tm, tk, N_p, Fb, Fmid, Fout, has_wa, has_wb, out_isz,
                     b_resident):
    ws = 2 * tm * tk * 2                                     # A block (bf16, x2 bufs)
    ws += (2 * N_p * Fb * 2) if b_resident else (2 * tk * Fb * 2)
    if has_wa:
        ws += 2 * Fb * Fmid * 2
    if has_wb:
        ws += 2 * Fmid * Fout * 2
    ws += 2 * tm * Fout * out_isz                            # output block
    ws += tm * Fb * 4                                        # f32 accumulator
    return ws


def _aggregate(A_p, B_p, Wa_p, Wb_p, *, apply_relu, out_dtype, tile_m, tile_k):
    """[relu]((A_p @ B_p) [@ Wa_p]) [@ Wb_p] on padded bf16 operands."""
    N_p = A_p.shape[0]
    Fb = B_p.shape[1]
    Fmid = Wa_p.shape[1] if Wa_p is not None else Fb
    Fout = Wb_p.shape[1] if Wb_p is not None else Fmid
    has_wa, has_wb = Wa_p is not None, Wb_p is not None
    out_isz = jnp.dtype(out_dtype).itemsize

    # VMEM budgeting: prefer a fully resident B; shrink the A tile if needed.
    tm, tk = tile_m, tile_k
    while True:
        ws_res = _agg_working_set(tm, tk, N_p, Fb, Fmid, Fout, has_wa, has_wb,
                                  out_isz, True)
        ws_str = _agg_working_set(tm, tk, N_p, Fb, Fmid, Fout, has_wa, has_wb,
                                  out_isz, False)
        if ws_res <= _VMEM_BUDGET:
            b_resident, total = True, ws_res
            break
        if ws_str <= _VMEM_BUDGET or (tk <= 256 and tm <= 128):
            b_resident, total = False, ws_str
            break
        if tk > 256:
            tk //= 2
        else:
            tm //= 2

    grid = (N_p // tm, N_p // tk)   # K-reduction last, "arbitrary"

    in_specs = [pl.BlockSpec((tm, tk), lambda i, k: (i, k))]
    operands = [A_p]
    if b_resident:
        in_specs.append(pl.BlockSpec((N_p, Fb), lambda i, k: (0, 0)))
    else:
        in_specs.append(pl.BlockSpec((tk, Fb), lambda i, k: (k, 0)))
    operands.append(B_p)
    if has_wa:
        in_specs.append(pl.BlockSpec((Fb, Fmid), lambda i, k: (0, 0)))
        operands.append(Wa_p)
    if has_wb:
        in_specs.append(pl.BlockSpec((Fmid, Fout), lambda i, k: (0, 0)))
        operands.append(Wb_p)

    flops = 2 * N_p * N_p * Fb
    if has_wa:
        flops += 2 * N_p * Fb * Fmid
    if has_wb:
        flops += 2 * N_p * Fmid * Fout
    bytes_accessed = (N_p * N_p * 2
                      + (N_p * Fb * 2 if b_resident
                         else (N_p // tm) * N_p * Fb * 2)
                      + (Fb * Fmid * 2 if has_wa else 0)
                      + (Fmid * Fout * 2 if has_wb else 0)
                      + N_p * Fout * out_isz)

    kernel = _make_agg_kernel(has_wa, has_wb, apply_relu, b_resident, tk)
    return pl.pallas_call(
        kernel,
        out_shape=jax.ShapeDtypeStruct((N_p, Fout), out_dtype),
        grid=grid,
        in_specs=in_specs,
        out_specs=pl.BlockSpec((tm, Fout), lambda i, k: (i, 0)),
        scratch_shapes=[pltpu.VMEM((tm, Fb), jnp.float32)],
        compiler_params=_vmem_params(total, ("parallel", "arbitrary")),
        cost_estimate=pl.CostEstimate(flops=flops, transcendentals=0,
                                      bytes_accessed=bytes_accessed),
    )(*operands)


def _dense_matmul(X_p, Wt_p, *, out_dtype, tile_m):
    """Row-tiled X_p @ Wt_p with a K-reduction grid axis (fc applied pre-agg)."""
    N_p, F = X_p.shape
    Fout = Wt_p.shape[1]
    out_isz = jnp.dtype(out_dtype).itemsize
    # Largest 128-multiple K tile that divides F (F is padded to a 128 multiple).
    tkf = next(t for t in (2048, 1024, 512, 256, 128) if F % t == 0)
    grid = (N_p // tile_m, F // tkf)

    total = (2 * tile_m * tkf * 2 + 2 * tkf * Fout * 2
             + 2 * tile_m * Fout * out_isz + tile_m * Fout * 4)
    flops = 2 * N_p * F * Fout
    bytes_accessed = (N_p * F * 2 + (N_p // tile_m) * F * Fout * 2
                      + N_p * Fout * out_isz)

    return pl.pallas_call(
        _dense_matmul_kernel,
        out_shape=jax.ShapeDtypeStruct((N_p, Fout), out_dtype),
        grid=grid,
        in_specs=[pl.BlockSpec((tile_m, tkf), lambda i, k: (i, k)),
                  pl.BlockSpec((tkf, Fout), lambda i, k: (k, 0))],
        out_specs=pl.BlockSpec((tile_m, Fout), lambda i, k: (i, 0)),
        scratch_shapes=[pltpu.VMEM((tile_m, Fout), jnp.float32)],
        compiler_params=_vmem_params(total, ("parallel", "arbitrary")),
        cost_estimate=pl.CostEstimate(flops=flops, transcendentals=0,
                                      bytes_accessed=bytes_accessed),
    )(X_p, Wt_p)


# ------------------------------- forward --------------------------------------

def gcn_forward(A, X, W1, W2, *, force_grid=False):
    """A: (N,N), X: (N,din), W1: (dh,din), W2: (dout,dh) — PyTorch Linear layout.

    Returns f32 (N, dout) equal to fc2(A @ relu(fc1(A @ X))) with bias-free
    Linears. bf16 operands with f32 MXU accumulation: expect ~1e-2 relative
    error vs an f32 reference (grows slowly with graph size).
    """
    N, din = X.shape
    dh = W1.shape[0]
    dout = W2.shape[0]

    din_p = _round_up(din, 128)
    dh_p = _round_up(dh, 128)
    dout_p = _round_up(dout, 128)

    # ---- small path: one VMEM-resident block, both layers fused -------------
    N_s = _round_up(N, 128)
    small_bytes = (N_s * N_s * 2                       # A (bf16)
                   + N_s * din_p * 2 + din_p * dh_p * 2 + dh_p * dout_p * 2
                   + N_s * dout_p * 4                  # f32 output
                   + N_s * (din_p + 2 * dh_p) * 4)     # f32 intermediates
    if small_bytes <= _SMALL_FUSED_BYTES and not force_grid:
        A_p = _pad2d(A.astype(_BF16), N_s, N_s)
        X_p = _pad2d(X.astype(_BF16), N_s, din_p)
        W1t_p = _pad2d(W1.T.astype(_BF16), din_p, dh_p)
        W2t_p = _pad2d(W2.T.astype(_BF16), dh_p, dout_p)
        flops = (2 * N_s * N_s * din_p + 2 * N_s * din_p * dh_p
                 + 2 * N_s * N_s * dh_p + 2 * N_s * dh_p * dout_p)
        bytes_accessed = ((N_s * N_s + N_s * din_p + din_p * dh_p
                           + dh_p * dout_p) * 2 + N_s * dout_p * 4)
        Z = pl.pallas_call(
            _fused_gcn_kernel,
            out_shape=jax.ShapeDtypeStruct((N_s, dout_p), jnp.float32),
            compiler_params=_vmem_params(2 * small_bytes),
            cost_estimate=pl.CostEstimate(flops=flops, transcendentals=0,
                                          bytes_accessed=bytes_accessed),
        )(A_p, X_p, W1t_p, W2t_p)
        return Z[:N, :dout]

    # ---- grid path -----------------------------------------------------------
    tile_m, tile_k, N_p = _choose_tiles(N)

    A_p = _pad2d(A.astype(_BF16), N_p, N_p)
    X_p = _pad2d(X.astype(_BF16), N_p, din_p)
    W1t_p = _pad2d(W1.T.astype(_BF16), din_p, dh_p)
    W2t_p = _pad2d(W2.T.astype(_BF16), dh_p, dout_p)

    # Fuse the fc2 weight multiply into layer-1's epilogue when it narrows the
    # matrix layer 2 has to aggregate (H is then never written to HBM).
    fuse_w2 = dout_p < dh_p

    if dh_p < din_p:
        # fc1 before aggregation: relu(A @ (X @ W1t)) — narrower aggregation.
        B1 = _dense_matmul(X_p, W1t_p, out_dtype=_BF16, tile_m=tile_m)
        Wa1 = None
    else:
        B1, Wa1 = X_p, W1t_p
    Wb1 = W2t_p if fuse_w2 else None

    HorHW = _aggregate(A_p, B1, Wa1, Wb1, apply_relu=True, out_dtype=_BF16,
                       tile_m=tile_m, tile_k=tile_k)

    if fuse_w2:
        Z = _aggregate(A_p, HorHW, None, None, apply_relu=False,
                       out_dtype=jnp.float32, tile_m=tile_m, tile_k=tile_k)
    else:
        Z = _aggregate(A_p, HorHW, W2t_p, None, apply_relu=False,
                       out_dtype=jnp.float32, tile_m=tile_m, tile_k=tile_k)

    return Z[:N, :dout]


def gcn_reference(A, X, W1, W2):
    h = jnp.maximum((A @ X) @ W1.T, 0.0)
    return (A @ h) @ W2.T


if __name__ == "__main__":
    key = jax.random.PRNGKey(0)
    k_a, k_x, k_w1, k_w2, k_a2, k_x2, k_w3, k_w4 = jax.random.split(key, 8)

    # ---- test 1: the module's natural small shapes (fused single-block path) -
    N = 8
    dim_in, dim_hidden, dim_out = 16, 32, 8

    A_raw = jax.random.uniform(k_a, (N, N), dtype=jnp.float32)
    A = 0.5 * (A_raw + A_raw.T) + jnp.eye(N, dtype=jnp.float32)
    A = A / jnp.sum(A, axis=1, keepdims=True)
    X = jax.random.normal(k_x, (N, dim_in), dtype=jnp.float32)
    W1 = jax.random.normal(k_w1, (dim_hidden, dim_in), dtype=jnp.float32) / jnp.sqrt(dim_in)
    W2 = jax.random.normal(k_w2, (dim_out, dim_hidden), dtype=jnp.float32) / jnp.sqrt(dim_hidden)

    out = jax.block_until_ready(gcn_forward(A, X, W1, W2))
    ref = gcn_reference(A, X, W1, W2)
    assert out.shape == (N, dim_out)
    assert jnp.allclose(out, ref, atol=3e-2, rtol=3e-2), "small fused path mismatch"

    # ---- test 2: grid path (tiled A, resident B, fused fc2 epilogue) --------
    N2, din2, dh2, dout2 = 520, 192, 320, 48
    A2 = jax.random.normal(k_a2, (N2, N2), dtype=jnp.float32) / jnp.sqrt(N2)
    X2 = jax.random.normal(k_x2, (N2, din2), dtype=jnp.float32)
    W1b = jax.random.normal(k_w3, (dh2, din2), dtype=jnp.float32) / jnp.sqrt(din2)
    W2b = jax.random.normal(k_w4, (dout2, dh2), dtype=jnp.float32) / jnp.sqrt(dh2)

    out2 = jax.block_until_ready(gcn_forward(A2, X2, W1b, W2b, force_grid=True))
    ref2 = gcn_reference(A2, X2, W1b, W2b)
    assert out2.shape == (N2, dout2)
    assert jnp.allclose(out2, ref2, atol=5e-2, rtol=5e-2), "grid path mismatch"

    # ---- test 3: grid path, fc1-before-aggregation branch (dh < din) --------
    N3, din3, dh3, dout3 = 520, 384, 128, 64
    W1c = jax.random.normal(k_w3, (dh3, din3), dtype=jnp.float32) / jnp.sqrt(din3)
    W2c = jax.random.normal(k_w4, (dout3, dh3), dtype=jnp.float32) / jnp.sqrt(dh3)
    X3 = jax.random.normal(k_x2, (N3, din3), dtype=jnp.float32)

    out3 = jax.block_until_ready(gcn_forward(A2, X3, W1c, W2c, force_grid=True))
    ref3 = gcn_reference(A2, X3, W1c, W2c)
    assert out3.shape == (N3, dout3)
    assert jnp.allclose(out3, ref3, atol=5e-2, rtol=5e-2), "pre-multiply path mismatch"

    print("KERNEL_OK")
</pallas_src>

<mosaic_0001>
module attributes {stable_mosaic.version = 11 : i64} {
  func.func @_fused_gcn_kernel(%arg0: memref<128x128xbf16, #tpu.memory_space<vmem>>, %arg1: memref<128x128xbf16, #tpu.memory_space<vmem>>, %arg2: memref<128x128xbf16, #tpu.memory_space<vmem>>, %arg3: memref<128x128xbf16, #tpu.memory_space<vmem>>, %arg4: memref<128x128xf32, #tpu.memory_space<vmem>>) attributes {dimension_semantics = [], scalar_prefetch = 0 : i64, scratch_operands = 0 : i64, tpu.core_type = #tpu.core_type<tc>} {
    %c0 = arith.constant 0 : index
    %c0_0 = arith.constant 0 : index
    %0 = vector.load %arg0[%c0, %c0_0] : memref<128x128xbf16, #tpu.memory_space<vmem>>, vector<128x128xbf16>
    %c0_1 = arith.constant 0 : index
    %c0_2 = arith.constant 0 : index
    %1 = vector.load %arg1[%c0_1, %c0_2] : memref<128x128xbf16, #tpu.memory_space<vmem>>, vector<128x128xbf16>
    %cst = arith.constant dense<0.000000e+00> : vector<128x128xf32>
    %2 = tpu.matmul %0, %1, %cst {dimension_numbers = #tpu.dot_dimension_numbers<[1], [0], [0], [1], [0, 0, 1, 1], [], []>} : vector<128x128xbf16>, vector<128x128xbf16>, vector<128x128xf32> -> vector<128x128xf32>
    %3 = arith.truncf %2 : vector<128x128xf32> to vector<128x128xbf16>
    %c0_3 = arith.constant 0 : index
    %c0_4 = arith.constant 0 : index
    %4 = vector.load %arg2[%c0_3, %c0_4] : memref<128x128xbf16, #tpu.memory_space<vmem>>, vector<128x128xbf16>
    %cst_5 = arith.constant dense<0.000000e+00> : vector<128x128xf32>
    %5 = tpu.matmul %3, %4, %cst_5 {dimension_numbers = #tpu.dot_dimension_numbers<[1], [0], [0], [1], [0, 0, 1, 1], [], []>} : vector<128x128xbf16>, vector<128x128xbf16>, vector<128x128xf32> -> vector<128x128xf32>
    %cst_6 = arith.constant 0.000000e+00 : f32
    %6 = vector.broadcast %cst_6 : f32 to vector<128x128xf32>
    %7 = arith.maximumf %5, %6 : vector<128x128xf32>
    %8 = arith.truncf %7 : vector<128x128xf32> to vector<128x128xbf16>
    %cst_7 = arith.constant dense<0.000000e+00> : vector<128x128xf32>
    %9 = tpu.matmul %0, %8, %cst_7 {dimension_numbers = #tpu.dot_dimension_numbers<[1], [0], [0], [1], [0, 0, 1, 1], [], []>} : vector<128x128xbf16>, vector<128x128xbf16>, vector<128x128xf32> -> vector<128x128xf32>
    %10 = arith.truncf %9 : vector<128x128xf32> to vector<128x128xbf16>
    %c0_8 = arith.constant 0 : index
    %c0_9 = arith.constant 0 : index
    %11 = vector.load %arg3[%c0_8, %c0_9] : memref<128x128xbf16, #tpu.memory_space<vmem>>, vector<128x128xbf16>
    %cst_10 = arith.constant dense<0.000000e+00> : vector<128x128xf32>
    %12 = tpu.matmul %10, %11, %cst_10 {dimension_numbers = #tpu.dot_dimension_numbers<[1], [0], [0], [1], [0, 0, 1, 1], [], []>} : vector<128x128xbf16>, vector<128x128xbf16>, vector<128x128xf32> -> vector<128x128xf32>
    %c0_11 = arith.constant 0 : index
    %c0_12 = arith.constant 0 : index
    %13 = vector.load %arg4[%c0_11, %c0_12] : memref<128x128xf32, #tpu.memory_space<vmem>>, vector<128x128xf32>
    tpu.vector_store %arg4[%c0_11, %c0_12], %12 {strides = array<i32>} : memref<128x128xf32, #tpu.memory_space<vmem>>, vector<128x128xf32>,
    return
  }
}

</mosaic_0001>

<bundles_post_ra>
// kernel: tpu_custom_call.1
= control target key start
LH: loop header
LB: loop body
LE: loop exit
PB: predicated region body
PF: predicated region fallthrough
CT: control target
= control target key end

     0   :  { %9 = vsyncpa [#allocation3], 0  ;;  %s988_s0 = inlined_call_operand.hbm [shape: bf16[128,128], index: 0, kind: input, shape index: {}]   ;;  %s989_s1 = inlined_call_operand.hbm [shape: bf16[128,128], index: 1, kind: input, shape index: {}]   ;;  %s990_s2 = inlined_call_operand.hbm [shape: bf16[128,128], index: 2, kind: input, shape index: {}]   ;;  %s991_s3 = inlined_call_operand.hbm [shape: bf16[128,128], index: 3, kind: input, shape index: {}]   ;;  %s992_s4 = inlined_call_operand.hbm [shape: f32[128,128], index: 4, kind: output, shape index: {}]  }
   0x1   :  { %10 = vsyncpa [#allocation6], 0 }
   0x2   :  { %11 = vsyncpa [#allocation9], 0 }
   0x3   :  { %12 = vsyncpa [#allocation4], 0  ;;  %s30_s17 = sshll.u32 %s989_s1, 4  ;;  %s907_s18 = smov [#allocation5]   ;;  %s31_s17 = int_to_ptr.hbm [resolvable:$true] %s30_s17 }
   0x4   :  { %s32_s19 = sshll.u32 %s907_s18, 4  ;;  %s17_s22 = sshll.u32 %s988_s0, 4  ;;  %s33_s19 = int_to_ptr.vmem [resolvable:$true] %s32_s19  ;;  %s18_s22 = int_to_ptr.hbm [resolvable:$true] %s17_s22 }
   0x5   :  { %s908_s23 = smov 64   ;;  %s909_s24 = smov 4  }
   0x6   :  { %38 = dma.hbm_to_vmem [thread:$0]  %s31_s17, 1024, %s33_s19, [#allocation6], %s908_s23, %s908_s23, %s909_s24  }
   0x7   :  { %s910_s25 = smov [#allocation2]   ;;  %s43_s29 = sshll.u32 %s990_s2, 4  ;;  %s44_s29 = int_to_ptr.hbm [resolvable:$true] %s43_s29 }
   0x8   :  { %s19_s26 = sshll.u32 %s910_s25, 4  ;;  %s56_s5 = sshll.u32 %s991_s3, 4  ;;  %s20_s26 = int_to_ptr.vmem [resolvable:$true] %s19_s26  ;;  %s57_s5 = int_to_ptr.hbm [resolvable:$true] %s56_s5 }
   0x9   :  { %25 = dma.hbm_to_vmem [thread:$0]  %s18_s22, 1024, %s20_s26, [#allocation3], %s908_s23, %s908_s23, %s909_s24  }
   0xa   :  { %s911_s6 = smov [#allocation7]   ;;  %s912_s0 = smov [#allocation8]  }
   0xb   :  { %s45_s7 = sshll.u32 %s911_s6, 4  ;;  %s58_s8 = sshll.u32 %s912_s0, 4  ;;  %s46_s7 = int_to_ptr.vmem [resolvable:$true] %s45_s7  ;;  %s59_s8 = int_to_ptr.vmem [resolvable:$true] %s58_s8 }
   0xc   :  { %51 = dma.hbm_to_vmem [thread:$0]  %s44_s29, 1024, %s46_s7, [#allocation6], %s908_s23, %s908_s23, %s909_s24  }
   0xd   :  { %64 = dma.hbm_to_vmem [thread:$0]  %s57_s5, 1024, %s59_s8, [#allocation9], %s908_s23, %s908_s23, %s909_s24  }
   0xe   :  { %899 = dma.done.wait [#allocation3], 1024  }
   0xf   :  { %900 = vsyncadd [#allocation3], 4294966272 }
  0x10   :  { %901 = dma.done.wait [#allocation6], 2048  }
  0x11   :  { %902 = vsyncadd [#allocation6], 4294965248 }
  0x12   :  { %903 = dma.done.wait [#allocation9], 1024  }
  0x13   :  { %904 = vsyncadd [#allocation9], 4294966272  ;;  %v753_v0 = vld [vmem:[#allocation5 + $0x38] sm:$0xff]  ;;  %v752_v1 = vld [vmem:[#allocation5 + $0x30] sm:$0xff]  ;;  %s913_s2 = smov [#allocation10]   ;;  %s595_s11 = sshll.u32 %s992_s4, 4  ;;  %s596_s11 = int_to_ptr.hbm [resolvable:$true] %s595_s11 }
  0x14   :  { %209 = vmatpush.bf16.msra.mxu0 %v753_v0  ;;  %v751_v2 = vld [vmem:[#allocation5 + $0x28] sm:$0xff]  ;;  %v750_v3 = vld [vmem:[#allocation5 + $0x20] sm:$0xff]  ;;  %v749_v4 = vld [vmem:[#allocation5 + $0x18] sm:$0xff]  ;;  %s593_s3 = sshll.u32 %s913_s2, 4  ;;  %s914_s12 = smov 128   ;;  %s594_s3 = int_to_ptr.vmem [resolvable:$true] %s593_s3 }
  0x15   :  { %v748_v5 = vld [vmem:[#allocation5 + $0x10] sm:$0xff]  ;;  %v747_v6 = vld [vmem:[#allocation5 + $0x8] sm:$0xff]  ;;  %v746_v7 = vld [vmem:[#allocation5] sm:$0xff]  ;;  %s915_s13 = smov 8  }
  0x16   :  { %v953_v8 = vld [vmem:[#allocation2] sm:$0xff]  ;;  %v956_v9 = vld [vmem:[#allocation2 + $0x8] sm:$0xff]  ;;  %v959_v10 = vld [vmem:[#allocation2 + $0x10] sm:$0xff] }
  0x17   :  { %v962_v11 = vld [vmem:[#allocation2 + $0x18] sm:$0xff]  ;;  %v965_v12 = vld [vmem:[#allocation2 + $0x20] sm:$0xff]  ;;  %v760_v14 = vld [vmem:[#allocation7 + $0x30] sm:$0xff] }
  0x18   :  { %210 = vmatpush.bf16.msra.mxu0 %v752_v1  ;;  %v761_v13 = vld [vmem:[#allocation7 + $0x38] sm:$0xff]  ;;  %v968_v15 = vld [vmem:[#allocation2 + $0x28] sm:$0xff]  ;;  %v758_v17 = vld [vmem:[#allocation7 + $0x20] sm:$0xff] }
  0x19   :  { %330 = vmatpush.bf16.msra.mxu1 %v761_v13  ;;  %v759_v16 = vld [vmem:[#allocation7 + $0x28] sm:$0xff]  ;;  %v757_v18 = vld [vmem:[#allocation7 + $0x18] sm:$0xff]  ;;  %v756_v19 = vld [vmem:[#allocation7 + $0x10] sm:$0xff] }
  0x1a   :  { %v971_v20 = vld [vmem:[#allocation2 + $0x30] sm:$0xff]  ;;  %v755_v21 = vld [vmem:[#allocation7 + $0x8] sm:$0xff]  ;;  %v754_v22 = vld [vmem:[#allocation7] sm:$0xff] }
  0x1b   :  { %v974_v23 = vld [vmem:[#allocation2 + $0x38] sm:$0xff] }
  0x1c   :  { %211 = vmatpush.bf16.msra.mxu0 %v751_v2 }
  0x1d   :  { %331 = vmatpush.bf16.msra.mxu1 %v760_v14 }
  0x20   :  { %212 = vmatpush.bf16.msra.mxu0 %v750_v3 }
  0x21   :  { %332 = vmatpush.bf16.msra.mxu1 %v759_v16 }
  0x24   :  { %213 = vmatpush.bf16.msra.mxu0 %v749_v4 }
  0x25   :  { %333 = vmatpush.bf16.msra.mxu1 %v758_v17 }
  0x28   :  { %214 = vmatpush.bf16.msra.mxu0 %v748_v5 }
  0x29   :  { %334 = vmatpush.bf16.msra.mxu1 %v757_v18 }
  0x2c   :  { %215 = vmatpush.bf16.msra.mxu0 %v747_v6 }
  0x2d   :  { %335 = vmatpush.bf16.msra.mxu1 %v756_v19 }
  0x30   :  { %216 = vmatpush.bf16.msra.mxu0 %v746_v7 }
  0x31   :  { %336 = vmatpush.bf16.msra.mxu1 %v755_v21 }
  0x33   :  { %217 = vmatmul.bf16.vlgmr.msra.gmra.mxu0 %v953_v8 }
  0x35   :  { %337 = vmatpush.bf16.msra.mxu1 %v754_v22 }
  0x43   :  { %222 = vmatmul.bf16.gmra.mxu0 %v956_v9 }
  0x53   :  { %227 = vmatmul.bf16.gmra.mxu0 %v959_v10 }
  0x63   :  { %232 = vmatmul.bf16.gmra.mxu0 %v962_v11 }
  0x73   :  { %237 = vmatmul.bf16.gmra.mxu0 %v965_v12 }
  0x83   :  { %242 = vmatmul.bf16.gmra.mxu0 %v968_v15 }
  0x93   :  { %247 = vmatmul.bf16.gmra.mxu0 %v971_v20 }
  0xa3   :  { %252 = vmatmul.bf16.gmra.mxu0 %v974_v23 }
  0xb0   :  { %v218_v24 = vpop.f32.mrf.mxu0 }
  0xb8   :  { %v220_v25 = vpop.f32.mrf.mxu0 }
  0xb9   :  { %v258_v26 = vpack.c.bf16 %v220_v25, %v218_v24 }
  0xbb   :  { %338 = vmatmul.bf16.vlgmr.msra.gmra.mxu1 %v258_v26 }
  0xc0   :  { %v223_v27 = vpop.f32.mrf.mxu0 }
  0xc8   :  { %v225_v28 = vpop.f32.mrf.mxu0 }
  0xc9   :  { %v259_v29 = vpack.c.bf16 %v225_v28, %v223_v27 }
  0xcb   :  { %343 = vmatmul.bf16.gmra.mxu1 %v259_v29 }
  0xd0   :  { %v228_v30 = vpop.f32.mrf.mxu0 }
  0xd8   :  { %v230_v31 = vpop.f32.mrf.mxu0 }
  0xd9   :  { %v260_v32 = vpack.c.bf16 %v230_v31, %v228_v30 }
  0xdb   :  { %348 = vmatmul.bf16.gmra.mxu1 %v260_v32  ;;  %v769_v32 = vld [vmem:[#allocation8 + $0x38] sm:$0xff] }
  0xdc   :  { %524 = vmatpush.bf16.msra.mxu3 %v769_v32 }
  0xe0   :  { %v233_v33 = vpop.f32.mrf.mxu0 }
  0xe8   :  { %v235_v34 = vpop.f32.mrf.mxu0 }
  0xe9   :  { %v261_v35 = vpack.c.bf16 %v235_v34, %v233_v33  ;;  %v768_v33 = vld [vmem:[#allocation8 + $0x30] sm:$0xff]  ;;  %v767_v34 = vld [vmem:[#allocation8 + $0x28] sm:$0xff] }
  0xea   :  { %525 = vmatpush.bf16.msra.mxu3 %v768_v33 }
  0xeb   :  { %353 = vmatmul.bf16.gmra.mxu1 %v261_v35  ;;  %v766_v35 = vld [vmem:[#allocation8 + $0x20] sm:$0xff] }
  0xee   :  { %526 = vmatpush.bf16.msra.mxu3 %v767_v34 }
  0xf0   :  { %v238_v36 = vpop.f32.mrf.mxu0 }
  0xf2   :  { %527 = vmatpush.bf16.msra.mxu3 %v766_v35 }
  0xf8   :  { %v240_v37 = vpop.f32.mrf.mxu0 }
  0xf9   :  { %v262_v38 = vpack.c.bf16 %v240_v37, %v238_v36  ;;  %v765_v36 = vld [vmem:[#allocation8 + $0x18] sm:$0xff] }
  0xfa   :  { %528 = vmatpush.bf16.msra.mxu3 %v765_v36 }
  0xfb   :  { %358 = vmatmul.bf16.gmra.mxu1 %v262_v38 }
 0x100   :  { %v243_v39 = vpop.f32.mrf.mxu0 }
 0x108   :  { %v245_v40 = vpop.f32.mrf.mxu0 }
 0x109   :  { %v263_v41 = vpack.c.bf16 %v245_v40, %v243_v39 }
 0x10b   :  { %363 = vmatmul.bf16.gmra.mxu1 %v263_v41 }
 0x110   :  { %v248_v42 = vpop.f32.mrf.mxu0 }
 0x118   :  { %v250_v43 = vpop.f32.mrf.mxu0 }
 0x119   :  { %v264_v44 = vpack.c.bf16 %v250_v43, %v248_v42 }
 0x11b   :  { %368 = vmatmul.bf16.gmra.mxu1 %v264_v44 }
 0x120   :  { %v253_v45 = vpop.f32.mrf.mxu0 }
 0x128   :  { %v255_v46 = vpop.f32.mrf.mxu0 }
 0x129   :  { %v265_v47 = vpack.c.bf16 %v255_v46, %v253_v45 }
 0x12b   :  { %373 = vmatmul.bf16.gmra.mxu1 %v265_v47 }
 0x138   :  { %v339_v48 = vpop.f32.mrf.mxu1 }
 0x139   :  { %v379_v50 = vmax.f32 %v339_v48, 0.0 }
 0x140   :  { %v341_v49 = vpop.f32.mrf.mxu1 }
 0x141   :  { %v380_v51 = vmax.f32 %v341_v49, 0.0 }
 0x143   :  { %v395_v52 = vpack.c.bf16 %v380_v51, %v379_v50 }
 0x148   :  { %v344_v53 = vpop.f32.mrf.mxu1 }
 0x149   :  { %v381_v55 = vmax.f32 %v344_v53, 0.0 }
 0x150   :  { %v346_v54 = vpop.f32.mrf.mxu1 }
 0x151   :  { %v382_v56 = vmax.f32 %v346_v54, 0.0 }
 0x153   :  { %v396_v57 = vpack.c.bf16 %v382_v56, %v381_v55 }
 0x158   :  { %v349_v58 = vpop.f32.mrf.mxu1 }
 0x159   :  { %v383_v60 = vmax.f32 %v349_v58, 0.0 }
 0x160   :  { %v351_v59 = vpop.f32.mrf.mxu1 }
 0x161   :  { %v384_v61 = vmax.f32 %v351_v59, 0.0 }
 0x163   :  { %v397_v62 = vpack.c.bf16 %v384_v61, %v383_v60 }
 0x168   :  { %v354_v63 = vpop.f32.mrf.mxu1 }
 0x169   :  { %v385_v1 = vmax.f32 %v354_v63, 0.0 }
 0x170   :  { %v356_v0 = vpop.f32.mrf.mxu1 }
 0x171   :  { %v386_v2 = vmax.f32 %v356_v0, 0.0 }
 0x173   :  { %v398_v3 = vpack.c.bf16 %v386_v2, %v385_v1 }
 0x178   :  { %v359_v4 = vpop.f32.mrf.mxu1 }
 0x179   :  { %v387_v30 = vmax.f32 %v359_v4, 0.0 }
 0x180   :  { %v361_v5 = vpop.f32.mrf.mxu1 }
 0x181   :  { %v388_v28 = vmax.f32 %v361_v5, 0.0 }
 0x183   :  { %v399_v31 = vpack.c.bf16 %v388_v28, %v387_v30 }
 0x188   :  { %v364_v6 = vpop.f32.mrf.mxu1 }
 0x189   :  { %v389_v27 = vmax.f32 %v364_v6, 0.0 }
 0x190   :  { %v366_v7 = vpop.f32.mrf.mxu1 }
 0x191   :  { %v390_v25 = vmax.f32 %v366_v7, 0.0 }
 0x193   :  { %v400_v29 = vpack.c.bf16 %v390_v25, %v389_v27 }
 0x198   :  { %v369_v13 = vpop.f32.mrf.mxu1 }
 0x199   :  { %v391_v24 = vmax.f32 %v369_v13, 0.0 }
 0x1a0   :  { %v371_v14 = vpop.f32.mrf.mxu1 }
 0x1a1   :  { %v392_v21 = vmax.f32 %v371_v14, 0.0 }
 0x1a3   :  { %v401_v26 = vpack.c.bf16 %v392_v21, %v391_v24 }
 0x1a8   :  { %v374_v16 = vpop.f32.mrf.mxu1 }
 0x1a9   :  { %v393_v18 = vmax.f32 %v374_v16, 0.0 }
 0x1b0   :  { %v376_v17 = vpop.f32.mrf.mxu1 }
 0x1b1   :  { %v394_v19 = vmax.f32 %v376_v17, 0.0 }
 0x1b3   :  { %v402_v22 = vpack.c.bf16 %v394_v19, %v393_v18 }
 0x1b5   :  { %403 = vmatpush.bf16.msra.mxu2 %v402_v22 }
 0x1b9   :  { %404 = vmatpush.bf16.msra.mxu2 %v401_v26 }
 0x1bd   :  { %405 = vmatpush.bf16.msra.mxu2 %v400_v29 }
 0x1c1   :  { %406 = vmatpush.bf16.msra.mxu2 %v399_v31 }
 0x1c5   :  { %407 = vmatpush.bf16.msra.mxu2 %v398_v3 }
 0x1c9   :  { %408 = vmatpush.bf16.msra.mxu2 %v397_v62 }
 0x1cd   :  { %409 = vmatpush.bf16.msra.mxu2 %v396_v57 }
 0x1d1   :  { %410 = vmatpush.bf16.msra.mxu2 %v395_v52 }
 0x1d4   :  { %411 = vmatmul.bf16.vlgmr.msra.gmra.mxu2 %v953_v8  ;;  %v764_v8 = vld [vmem:[#allocation8 + $0x10] sm:$0xff] }
 0x1d5   :  { %529 = vmatpush.bf16.msra.mxu3 %v764_v8 }
 0x1e4   :  { %416 = vmatmul.bf16.gmra.mxu2 %v956_v9  ;;  %v763_v9 = vld [vmem:[#allocation8 + $0x8] sm:$0xff] }
 0x1e5   :  { %530 = vmatpush.bf16.msra.mxu3 %v763_v9 }
 0x1f4   :  { %421 = vmatmul.bf16.gmra.mxu2 %v959_v10  ;;  %v762_v10 = vld [vmem:[#allocation8] sm:$0xff] }
 0x1f5   :  { %531 = vmatpush.bf16.msra.mxu3 %v762_v10 }
 0x204   :  { %426 = vmatmul.bf16.gmra.mxu2 %v962_v11 }
 0x214   :  { %431 = vmatmul.bf16.gmra.mxu2 %v965_v12 }
 0x224   :  { %436 = vmatmul.bf16.gmra.mxu2 %v968_v15 }
 0x234   :  { %441 = vmatmul.bf16.gmra.mxu2 %v971_v20 }
 0x244   :  { %446 = vmatmul.bf16.gmra.mxu2 %v974_v23 }
 0x257   :  { %v412_v11 = vpop.f32.mrf.mxu2 }
 0x25f   :  { %v414_v12 = vpop.f32.mrf.mxu2 }
 0x260   :  { %v452_v15 = vpack.c.bf16 %v414_v12, %v412_v11 }
 0x262   :  { %532 = vmatmul.bf16.vlgmr.msra.gmra.mxu3 %v452_v15 }
 0x267   :  { %v417_v37 = vpop.f32.mrf.mxu2 }
 0x26f   :  { %v419_v38 = vpop.f32.mrf.mxu2 }
 0x270   :  { %v453_v39 = vpack.c.bf16 %v419_v38, %v417_v37 }
 0x272   :  { %537 = vmatmul.bf16.gmra.mxu3 %v453_v39 }
 0x277   :  { %v422_v40 = vpop.f32.mrf.mxu2 }
 0x27f   :  { %v424_v41 = vpop.f32.mrf.mxu2 }
 0x280   :  { %v454_v42 = vpack.c.bf16 %v424_v41, %v422_v40 }
 0x282   :  { %542 = vmatmul.bf16.gmra.mxu3 %v454_v42 }
 0x287   :  { %v427_v20 = vpop.f32.mrf.mxu2 }
 0x28f   :  { %v429_v43 = vpop.f32.mrf.mxu2 }
 0x290   :  { %v455_v44 = vpack.c.bf16 %v429_v43, %v427_v20 }
 0x292   :  { %547 = vmatmul.bf16.gmra.mxu3 %v455_v44 }
 0x297   :  { %v432_v45 = vpop.f32.mrf.mxu2 }
 0x29f   :  { %v434_v46 = vpop.f32.mrf.mxu2 }
 0x2a0   :  { %v456_v47 = vpack.c.bf16 %v434_v46, %v432_v45 }
 0x2a2   :  { %552 = vmatmul.bf16.gmra.mxu3 %v456_v47 }
 0x2a7   :  { %v437_v23 = vpop.f32.mrf.mxu2 }
 0x2af   :  { %v439_v48 = vpop.f32.mrf.mxu2 }
 0x2b0   :  { %v457_v49 = vpack.c.bf16 %v439_v48, %v437_v23 }
 0x2b2   :  { %557 = vmatmul.bf16.gmra.mxu3 %v457_v49 }
 0x2b7   :  { %v442_v50 = vpop.f32.mrf.mxu2 }
 0x2bf   :  { %v444_v51 = vpop.f32.mrf.mxu2 }
 0x2c0   :  { %v458_v52 = vpack.c.bf16 %v444_v51, %v442_v50 }
 0x2c2   :  { %562 = vmatmul.bf16.gmra.mxu3 %v458_v52 }
 0x2c7   :  { %v447_v53 = vpop.f32.mrf.mxu2 }
 0x2cf   :  { %v449_v54 = vpop.f32.mrf.mxu2 }
 0x2d0   :  { %v459_v55 = vpack.c.bf16 %v449_v54, %v447_v53 }
 0x2d2   :  { %567 = vmatmul.bf16.gmra.mxu3 %v459_v55 }
 0x2e5   :  { %v533_v56 = vpop.f32.mrf.mxu3 }
 0x2e6   :  { %573 = vst [vmem:[#allocation10] sm:$0xff] %v533_v56 }
 0x2ed   :  { %v535_v57 = vpop.f32.mrf.mxu3 }
 0x2ee   :  { %574 = vst [vmem:[#allocation10 + $0x8] sm:$0xff] %v535_v57 }
 0x2f5   :  { %v538_v58 = vpop.f32.mrf.mxu3 }
 0x2f6   :  { %575 = vst [vmem:[#allocation10 + $0x10] sm:$0xff] %v538_v58 }
 0x2fd   :  { %v540_v59 = vpop.f32.mrf.mxu3 }
 0x2fe   :  { %576 = vst [vmem:[#allocation10 + $0x18] sm:$0xff] %v540_v59 }
 0x305   :  { %v543_v60 = vpop.f32.mrf.mxu3 }
 0x306   :  { %577 = vst [vmem:[#allocation10 + $0x20] sm:$0xff] %v543_v60 }
 0x30d   :  { %v545_v61 = vpop.f32.mrf.mxu3 }
 0x30e   :  { %578 = vst [vmem:[#allocation10 + $0x28] sm:$0xff] %v545_v61 }
 0x315   :  { %v548_v62 = vpop.f32.mrf.mxu3 }
 0x316   :  { %579 = vst [vmem:[#allocation10 + $0x30] sm:$0xff] %v548_v62 }
 0x31d   :  { %v550_v63 = vpop.f32.mrf.mxu3 }
 0x31e   :  { %580 = vst [vmem:[#allocation10 + $0x38] sm:$0xff] %v550_v63 }
 0x325   :  { %v553_v0 = vpop.f32.mrf.mxu3 }
 0x326   :  { %581 = vst [vmem:[#allocation10 + $0x40] sm:$0xff] %v553_v0 }
 0x32d   :  { %v555_v1 = vpop.f32.mrf.mxu3 }
 0x32e   :  { %582 = vst [vmem:[#allocation10 + $0x48] sm:$0xff] %v555_v1 }
 0x335   :  { %v558_v2 = vpop.f32.mrf.mxu3 }
 0x336   :  { %583 = vst [vmem:[#allocation10 + $0x50] sm:$0xff] %v558_v2 }
 0x33d   :  { %v560_v3 = vpop.f32.mrf.mxu3 }
 0x33e   :  { %584 = vst [vmem:[#allocation10 + $0x58] sm:$0xff] %v560_v3 }
 0x345   :  { %v563_v4 = vpop.f32.mrf.mxu3 }
 0x346   :  { %585 = vst [vmem:[#allocation10 + $0x60] sm:$0xff] %v563_v4 }
 0x34d   :  { %v565_v5 = vpop.f32.mrf.mxu3 }
 0x34e   :  { %586 = vst [vmem:[#allocation10 + $0x68] sm:$0xff] %v565_v5 }
 0x355   :  { %v568_v6 = vpop.f32.mrf.mxu3 }
 0x356   :  { %587 = vst [vmem:[#allocation10 + $0x70] sm:$0xff] %v568_v6 }
 0x35d   :  { %v570_v7 = vpop.f32.mrf.mxu3 }
 0x35e   :  { %588 = vst [vmem:[#allocation10 + $0x78] sm:$0xff] %v570_v7 }
 0x35f   :  { %601 = dma.vmem_to_hbm [thread:$0]  %s594_s3, 2048, %s596_s11, [#allocation4], %s914_s12, %s914_s12, %s915_s13  }
 0x360   :  { %905 = dma.done.wait [#allocation4], 2048  }
 0x361   :  { %906 = vsyncadd [#allocation4], 4294965248 }
 0x362   :  { %606 = vsyncpa [#allocation3], 1 }
 0x363   :  { %607 = vsyncpa [#allocation6], 1 }
 0x364   :  { %608 = vsyncpa [#allocation9], 1 }
 0x365   :  { %609 = vsyncpa [#allocation4], 1 }

</bundles_post_ra>
